<compile_context>
chip_gen: v7x
topology: tpu7x:2x2x1
jax: 0.10.0
libtpu: 0.0.40
codegen_flags: <defaults>
</compile_context>

<pallas_src>
import jax
import jax.numpy as jnp
from jax.experimental import pallas as pl
from jax.experimental.pallas import tpu as pltpu


def _seqnet_kernel(x_ref, w1_ref, b1_ref, w2_ref, b2_ref, w3_ref, b3_ref, o_ref):
    """x_ref: (F, TILE_B) VMEM block. Weights/biases: tiny SMEM arrays (scalar reads).
    o_ref: (1, TILE_B) lane-dense VMEM block."""
    F, H1 = w1_ref.shape
    H2 = w2_ref.shape[1]

    # Rows of x, each a lane-dense (1, TILE_B) vector.
    xs = [x_ref[f:f + 1, :] for f in range(F)]

    # Layer 1: Linear(F -> H1) + ReLU, unrolled scalar*vector FMAs on the VPU.
    h1 = []
    for j in range(H1):
        acc = xs[0] * w1_ref[0, j]
        for f in range(1, F):
            acc = acc + xs[f] * w1_ref[f, j]
        h1.append(jnp.maximum(acc + b1_ref[j], 0.0))

    # Layer 2: Linear(H1 -> H2) + ReLU.
    h2 = []
    for k in range(H2):
        acc = h1[0] * w2_ref[0, k]
        for j in range(1, H1):
            acc = acc + h1[j] * w2_ref[j, k]
        h2.append(jnp.maximum(acc + b2_ref[k], 0.0))

    # Layer 3: Linear(H2 -> 1) + Sigmoid (exp runs on the EUP; exact f32 divide keeps
    # bit-level parity with the reference).
    z = h2[0] * w3_ref[0]
    for k in range(1, H2):
        z = z + h2[k] * w3_ref[k]
    z = z + b3_ref[0]
    o_ref[...] = 1.0 / (1.0 + jnp.exp(-z))


def seqnet_forward(x, params, tile_b=8192):
    """x: (B, F) f32. Returns (B,) f32, matching SeqNet.forward (incl. squeeze(1))."""
    w1, b1, w2, b2, w3, b3 = params
    B, F = x.shape

    # Lane-dense batch tiling: tiles are multiples of 128 lanes, bounded by tile_b.
    padded_b = pl.cdiv(B, 128) * 128
    tile_b = min(tile_b, padded_b)
    padded_b = pl.cdiv(padded_b, tile_b) * tile_b
    grid = (padded_b // tile_b,)

    # Batch-on-lanes: present x as (F, padded_B). Wrapper-side transpose/pad is layout plumbing.
    xt = jnp.zeros((F, padded_b), jnp.float32).at[:, :B].set(x.T.astype(jnp.float32))

    smem = pl.BlockSpec(memory_space=pltpu.MemorySpace.SMEM)

    out = pl.pallas_call(
        _seqnet_kernel,
        out_shape=jax.ShapeDtypeStruct((1, padded_b), jnp.float32),
        grid=grid,
        in_specs=[
            pl.BlockSpec((F, tile_b), lambda i: (0, i)),   # x tile, lane-dense, double-buffered
            smem, smem,                                    # w1 (F,H1),  b1 (H1,)
            smem, smem,                                    # w2 (H1,H2), b2 (H2,)
            smem, smem,                                    # w3 (H2,),   b3 (1,)
        ],
        out_specs=pl.BlockSpec((1, tile_b), lambda i: (0, i)),   # lane-dense output block
        compiler_params=pltpu.CompilerParams(
            dimension_semantics=("parallel",),
        ),
    )(xt, w1, b1, w2, b2, w3, b3)

    return out[0, :B]   # the module's squeeze(1), minus padding


def init_params(key, inp_features=2, hl_1_nd=5, hl_2_nd=3):
    """Deterministic synthetic parameters. Weights stored (in, out) = PyTorch weight.T."""
    ks = jax.random.split(key, 6)
    w1 = jax.random.normal(ks[0], (inp_features, hl_1_nd), jnp.float32) * 0.5
    b1 = jax.random.normal(ks[1], (hl_1_nd,), jnp.float32) * 0.1
    w2 = jax.random.normal(ks[2], (hl_1_nd, hl_2_nd), jnp.float32) * 0.5
    b2 = jax.random.normal(ks[3], (hl_2_nd,), jnp.float32) * 0.1
    w3 = jax.random.normal(ks[4], (hl_2_nd,), jnp.float32) * 0.5
    b3 = jax.random.normal(ks[5], (1,), jnp.float32) * 0.1
    return (w1, b1, w2, b2, w3, b3)


def _reference(x, params):
    w1, b1, w2, b2, w3, b3 = params
    h1 = jnp.maximum(x @ w1 + b1, 0.0)
    h2 = jnp.maximum(h1 @ w2 + b2, 0.0)
    z = h2 @ w3 + b3[0]
    return jax.nn.sigmoid(z)


if __name__ == "__main__":
    key = jax.random.PRNGKey(0)
    k_x, k_p = jax.random.split(key)

    B, F = 1000, 2  # inp_features=2 as in the module defaults; B exercises padding + grid
    x = jax.random.normal(k_x, (B, F), jnp.float32)
    params = init_params(k_p, inp_features=F, hl_1_nd=5, hl_2_nd=3)

    # tile_b=256 -> padded batch 1024, grid of 4 batch tiles (exercises the pipeline).
    out = jax.block_until_ready(seqnet_forward(x, params, tile_b=256))

    ref = _reference(x, params)
    assert out.shape == (B,), out.shape
    assert jnp.allclose(out, ref, atol=1e-5, rtol=1e-5), (out, ref)

    print("KERNEL_OK")
</pallas_src>

<mosaic_0001>
module attributes {stable_mosaic.version = 11 : i64} {
  func.func @_seqnet_kernel(%arg0: i32, %arg1: memref<2x256xf32, #tpu.memory_space<vmem>>, %arg2: memref<2x5xf32, #tpu.memory_space<smem>>, %arg3: memref<5xf32, #tpu.memory_space<smem>>, %arg4: memref<5x3xf32, #tpu.memory_space<smem>>, %arg5: memref<3xf32, #tpu.memory_space<smem>>, %arg6: memref<3xf32, #tpu.memory_space<smem>>, %arg7: memref<1xf32, #tpu.memory_space<smem>>, %arg8: memref<1x256xf32, #tpu.memory_space<vmem>>) attributes {dimension_semantics = [#tpu.dimension_semantics<parallel>], iteration_bounds = array<i64: 4>, scalar_prefetch = 0 : i64, scratch_operands = 0 : i64, tpu.core_type = #tpu.core_type<tc>, window_params = [{transform_indices = @transform_0, window_bounds = array<i64: 2, 256>}, {transform_indices = @transform_1, window_bounds = array<i64: 2, 5>}, {transform_indices = @transform_2, window_bounds = array<i64: 5>}, {transform_indices = @transform_3, window_bounds = array<i64: 5, 3>}, {transform_indices = @transform_4, window_bounds = array<i64: 3>}, {transform_indices = @transform_5, window_bounds = array<i64: 3>}, {transform_indices = @transform_6, window_bounds = array<i64: 1>}, {transform_indices = @transform_7, window_bounds = array<i64: 1, 256>}]} {
    %c0 = arith.constant 0 : index
    %c0_0 = arith.constant 0 : index
    %0 = vector.load %arg1[%c0, %c0_0] : memref<2x256xf32, #tpu.memory_space<vmem>>, vector<1x256xf32>
    %c1 = arith.constant 1 : index
    %c0_1 = arith.constant 0 : index
    %1 = vector.load %arg1[%c1, %c0_1] : memref<2x256xf32, #tpu.memory_space<vmem>>, vector<1x256xf32>
    %c0_2 = arith.constant 0 : index
    %c0_3 = arith.constant 0 : index
    %2 = memref.load %arg2[%c0_2, %c0_3] : memref<2x5xf32, #tpu.memory_space<smem>>
    %3 = vector.broadcast %2 : f32 to vector<1x256xf32>
    %4 = arith.mulf %0, %3 : vector<1x256xf32>
    %c1_4 = arith.constant 1 : index
    %c0_5 = arith.constant 0 : index
    %5 = memref.load %arg2[%c1_4, %c0_5] : memref<2x5xf32, #tpu.memory_space<smem>>
    %6 = vector.broadcast %5 : f32 to vector<1x256xf32>
    %7 = arith.mulf %1, %6 : vector<1x256xf32>
    %8 = arith.addf %4, %7 : vector<1x256xf32>
    %c0_6 = arith.constant 0 : index
    %9 = memref.load %arg3[%c0_6] : memref<5xf32, #tpu.memory_space<smem>>
    %10 = vector.broadcast %9 : f32 to vector<1x256xf32>
    %11 = arith.addf %8, %10 : vector<1x256xf32>
    %cst = arith.constant 0.000000e+00 : f32
    %12 = vector.broadcast %cst : f32 to vector<1x256xf32>
    %13 = arith.maximumf %11, %12 : vector<1x256xf32>
    %c0_7 = arith.constant 0 : index
    %c1_8 = arith.constant 1 : index
    %14 = memref.load %arg2[%c0_7, %c1_8] : memref<2x5xf32, #tpu.memory_space<smem>>
    %15 = vector.broadcast %14 : f32 to vector<1x256xf32>
    %16 = arith.mulf %0, %15 : vector<1x256xf32>
    %c1_9 = arith.constant 1 : index
    %c1_10 = arith.constant 1 : index
    %17 = memref.load %arg2[%c1_9, %c1_10] : memref<2x5xf32, #tpu.memory_space<smem>>
    %18 = vector.broadcast %17 : f32 to vector<1x256xf32>
    %19 = arith.mulf %1, %18 : vector<1x256xf32>
    %20 = arith.addf %16, %19 : vector<1x256xf32>
    %c1_11 = arith.constant 1 : index
    %21 = memref.load %arg3[%c1_11] : memref<5xf32, #tpu.memory_space<smem>>
    %22 = vector.broadcast %21 : f32 to vector<1x256xf32>
    %23 = arith.addf %20, %22 : vector<1x256xf32>
    %cst_12 = arith.constant 0.000000e+00 : f32
    %24 = vector.broadcast %cst_12 : f32 to vector<1x256xf32>
    %25 = arith.maximumf %23, %24 : vector<1x256xf32>
    %c0_13 = arith.constant 0 : index
    %c2 = arith.constant 2 : index
    %26 = memref.load %arg2[%c0_13, %c2] : memref<2x5xf32, #tpu.memory_space<smem>>
    %27 = vector.broadcast %26 : f32 to vector<1x256xf32>
    %28 = arith.mulf %0, %27 : vector<1x256xf32>
    %c1_14 = arith.constant 1 : index
    %c2_15 = arith.constant 2 : index
    %29 = memref.load %arg2[%c1_14, %c2_15] : memref<2x5xf32, #tpu.memory_space<smem>>
    %30 = vector.broadcast %29 : f32 to vector<1x256xf32>
    %31 = arith.mulf %1, %30 : vector<1x256xf32>
    %32 = arith.addf %28, %31 : vector<1x256xf32>
    %c2_16 = arith.constant 2 : index
    %33 = memref.load %arg3[%c2_16] : memref<5xf32, #tpu.memory_space<smem>>
    %34 = vector.broadcast %33 : f32 to vector<1x256xf32>
    %35 = arith.addf %32, %34 : vector<1x256xf32>
    %cst_17 = arith.constant 0.000000e+00 : f32
    %36 = vector.broadcast %cst_17 : f32 to vector<1x256xf32>
    %37 = arith.maximumf %35, %36 : vector<1x256xf32>
    %c0_18 = arith.constant 0 : index
    %c3 = arith.constant 3 : index
    %38 = memref.load %arg2[%c0_18, %c3] : memref<2x5xf32, #tpu.memory_space<smem>>
    %39 = vector.broadcast %38 : f32 to vector<1x256xf32>
    %40 = arith.mulf %0, %39 : vector<1x256xf32>
    %c1_19 = arith.constant 1 : index
    %c3_20 = arith.constant 3 : index
    %41 = memref.load %arg2[%c1_19, %c3_20] : memref<2x5xf32, #tpu.memory_space<smem>>
    %42 = vector.broadcast %41 : f32 to vector<1x256xf32>
    %43 = arith.mulf %1, %42 : vector<1x256xf32>
    %44 = arith.addf %40, %43 : vector<1x256xf32>
    %c3_21 = arith.constant 3 : index
    %45 = memref.load %arg3[%c3_21] : memref<5xf32, #tpu.memory_space<smem>>
    %46 = vector.broadcast %45 : f32 to vector<1x256xf32>
    %47 = arith.addf %44, %46 : vector<1x256xf32>
    %cst_22 = arith.constant 0.000000e+00 : f32
    %48 = vector.broadcast %cst_22 : f32 to vector<1x256xf32>
    %49 = arith.maximumf %47, %48 : vector<1x256xf32>
    %c0_23 = arith.constant 0 : index
    %c4 = arith.constant 4 : index
    %50 = memref.load %arg2[%c0_23, %c4] : memref<2x5xf32, #tpu.memory_space<smem>>
    %51 = vector.broadcast %50 : f32 to vector<1x256xf32>
    %52 = arith.mulf %0, %51 : vector<1x256xf32>
    %c1_24 = arith.constant 1 : index
    %c4_25 = arith.constant 4 : index
    %53 = memref.load %arg2[%c1_24, %c4_25] : memref<2x5xf32, #tpu.memory_space<smem>>
    %54 = vector.broadcast %53 : f32 to vector<1x256xf32>
    %55 = arith.mulf %1, %54 : vector<1x256xf32>
    %56 = arith.addf %52, %55 : vector<1x256xf32>
    %c4_26 = arith.constant 4 : index
    %57 = memref.load %arg3[%c4_26] : memref<5xf32, #tpu.memory_space<smem>>
    %58 = vector.broadcast %57 : f32 to vector<1x256xf32>
    %59 = arith.addf %56, %58 : vector<1x256xf32>
    %cst_27 = arith.constant 0.000000e+00 : f32
    %60 = vector.broadcast %cst_27 : f32 to vector<1x256xf32>
    %61 = arith.maximumf %59, %60 : vector<1x256xf32>
    %c0_28 = arith.constant 0 : index
    %c0_29 = arith.constant 0 : index
    %62 = memref.load %arg4[%c0_28, %c0_29] : memref<5x3xf32, #tpu.memory_space<smem>>
    %63 = vector.broadcast %62 : f32 to vector<1x256xf32>
    %64 = arith.mulf %13, %63 : vector<1x256xf32>
    %c1_30 = arith.constant 1 : index
    %c0_31 = arith.constant 0 : index
    %65 = memref.load %arg4[%c1_30, %c0_31] : memref<5x3xf32, #tpu.memory_space<smem>>
    %66 = vector.broadcast %65 : f32 to vector<1x256xf32>
    %67 = arith.mulf %25, %66 : vector<1x256xf32>
    %68 = arith.addf %64, %67 : vector<1x256xf32>
    %c2_32 = arith.constant 2 : index
    %c0_33 = arith.constant 0 : index
    %69 = memref.load %arg4[%c2_32, %c0_33] : memref<5x3xf32, #tpu.memory_space<smem>>
    %70 = vector.broadcast %69 : f32 to vector<1x256xf32>
    %71 = arith.mulf %37, %70 : vector<1x256xf32>
    %72 = arith.addf %68, %71 : vector<1x256xf32>
    %c3_34 = arith.constant 3 : index
    %c0_35 = arith.constant 0 : index
    %73 = memref.load %arg4[%c3_34, %c0_35] : memref<5x3xf32, #tpu.memory_space<smem>>
    %74 = vector.broadcast %73 : f32 to vector<1x256xf32>
    %75 = arith.mulf %49, %74 : vector<1x256xf32>
    %76 = arith.addf %72, %75 : vector<1x256xf32>
    %c4_36 = arith.constant 4 : index
    %c0_37 = arith.constant 0 : index
    %77 = memref.load %arg4[%c4_36, %c0_37] : memref<5x3xf32, #tpu.memory_space<smem>>
    %78 = vector.broadcast %77 : f32 to vector<1x256xf32>
    %79 = arith.mulf %61, %78 : vector<1x256xf32>
    %80 = arith.addf %76, %79 : vector<1x256xf32>
    %c0_38 = arith.constant 0 : index
    %81 = memref.load %arg5[%c0_38] : memref<3xf32, #tpu.memory_space<smem>>
    %82 = vector.broadcast %81 : f32 to vector<1x256xf32>
    %83 = arith.addf %80, %82 : vector<1x256xf32>
    %cst_39 = arith.constant 0.000000e+00 : f32
    %84 = vector.broadcast %cst_39 : f32 to vector<1x256xf32>
    %85 = arith.maximumf %83, %84 : vector<1x256xf32>
    %c0_40 = arith.constant 0 : index
    %c1_41 = arith.constant 1 : index
    %86 = memref.load %arg4[%c0_40, %c1_41] : memref<5x3xf32, #tpu.memory_space<smem>>
    %87 = vector.broadcast %86 : f32 to vector<1x256xf32>
    %88 = arith.mulf %13, %87 : vector<1x256xf32>
    %c1_42 = arith.constant 1 : index
    %c1_43 = arith.constant 1 : index
    %89 = memref.load %arg4[%c1_42, %c1_43] : memref<5x3xf32, #tpu.memory_space<smem>>
    %90 = vector.broadcast %89 : f32 to vector<1x256xf32>
    %91 = arith.mulf %25, %90 : vector<1x256xf32>
    %92 = arith.addf %88, %91 : vector<1x256xf32>
    %c2_44 = arith.constant 2 : index
    %c1_45 = arith.constant 1 : index
    %93 = memref.load %arg4[%c2_44, %c1_45] : memref<5x3xf32, #tpu.memory_space<smem>>
    %94 = vector.broadcast %93 : f32 to vector<1x256xf32>
    %95 = arith.mulf %37, %94 : vector<1x256xf32>
    %96 = arith.addf %92, %95 : vector<1x256xf32>
    %c3_46 = arith.constant 3 : index
    %c1_47 = arith.constant 1 : index
    %97 = memref.load %arg4[%c3_46, %c1_47] : memref<5x3xf32, #tpu.memory_space<smem>>
    %98 = vector.broadcast %97 : f32 to vector<1x256xf32>
    %99 = arith.mulf %49, %98 : vector<1x256xf32>
    %100 = arith.addf %96, %99 : vector<1x256xf32>
    %c4_48 = arith.constant 4 : index
    %c1_49 = arith.constant 1 : index
    %101 = memref.load %arg4[%c4_48, %c1_49] : memref<5x3xf32, #tpu.memory_space<smem>>
    %102 = vector.broadcast %101 : f32 to vector<1x256xf32>
    %103 = arith.mulf %61, %102 : vector<1x256xf32>
    %104 = arith.addf %100, %103 : vector<1x256xf32>
    %c1_50 = arith.constant 1 : index
    %105 = memref.load %arg5[%c1_50] : memref<3xf32, #tpu.memory_space<smem>>
    %106 = vector.broadcast %105 : f32 to vector<1x256xf32>
    %107 = arith.addf %104, %106 : vector<1x256xf32>
    %cst_51 = arith.constant 0.000000e+00 : f32
    %108 = vector.broadcast %cst_51 : f32 to vector<1x256xf32>
    %109 = arith.maximumf %107, %108 : vector<1x256xf32>
    %c0_52 = arith.constant 0 : index
    %c2_53 = arith.constant 2 : index
    %110 = memref.load %arg4[%c0_52, %c2_53] : memref<5x3xf32, #tpu.memory_space<smem>>
    %111 = vector.broadcast %110 : f32 to vector<1x256xf32>
    %112 = arith.mulf %13, %111 : vector<1x256xf32>
    %c1_54 = arith.constant 1 : index
    %c2_55 = arith.constant 2 : index
    %113 = memref.load %arg4[%c1_54, %c2_55] : memref<5x3xf32, #tpu.memory_space<smem>>
    %114 = vector.broadcast %113 : f32 to vector<1x256xf32>
    %115 = arith.mulf %25, %114 : vector<1x256xf32>
    %116 = arith.addf %112, %115 : vector<1x256xf32>
    %c2_56 = arith.constant 2 : index
    %c2_57 = arith.constant 2 : index
    %117 = memref.load %arg4[%c2_56, %c2_57] : memref<5x3xf32, #tpu.memory_space<smem>>
    %118 = vector.broadcast %117 : f32 to vector<1x256xf32>
    %119 = arith.mulf %37, %118 : vector<1x256xf32>
    %120 = arith.addf %116, %119 : vector<1x256xf32>
    %c3_58 = arith.constant 3 : index
    %c2_59 = arith.constant 2 : index
    %121 = memref.load %arg4[%c3_58, %c2_59] : memref<5x3xf32, #tpu.memory_space<smem>>
    %122 = vector.broadcast %121 : f32 to vector<1x256xf32>
    %123 = arith.mulf %49, %122 : vector<1x256xf32>
    %124 = arith.addf %120, %123 : vector<1x256xf32>
    %c4_60 = arith.constant 4 : index
    %c2_61 = arith.constant 2 : index
    %125 = memref.load %arg4[%c4_60, %c2_61] : memref<5x3xf32, #tpu.memory_space<smem>>
    %126 = vector.broadcast %125 : f32 to vector<1x256xf32>
    %127 = arith.mulf %61, %126 : vector<1x256xf32>
    %128 = arith.addf %124, %127 : vector<1x256xf32>
    %c2_62 = arith.constant 2 : index
    %129 = memref.load %arg5[%c2_62] : memref<3xf32, #tpu.memory_space<smem>>
    %130 = vector.broadcast %129 : f32 to vector<1x256xf32>
    %131 = arith.addf %128, %130 : vector<1x256xf32>
    %cst_63 = arith.constant 0.000000e+00 : f32
    %132 = vector.broadcast %cst_63 : f32 to vector<1x256xf32>
    %133 = arith.maximumf %131, %132 : vector<1x256xf32>
    %c0_64 = arith.constant 0 : index
    %134 = memref.load %arg6[%c0_64] : memref<3xf32, #tpu.memory_space<smem>>
    %135 = vector.broadcast %134 : f32 to vector<1x256xf32>
    %136 = arith.mulf %85, %135 : vector<1x256xf32>
    %c1_65 = arith.constant 1 : index
    %137 = memref.load %arg6[%c1_65] : memref<3xf32, #tpu.memory_space<smem>>
    %138 = vector.broadcast %137 : f32 to vector<1x256xf32>
    %139 = arith.mulf %109, %138 : vector<1x256xf32>
    %140 = arith.addf %136, %139 : vector<1x256xf32>
    %c2_66 = arith.constant 2 : index
    %141 = memref.load %arg6[%c2_66] : memref<3xf32, #tpu.memory_space<smem>>
    %142 = vector.broadcast %141 : f32 to vector<1x256xf32>
    %143 = arith.mulf %133, %142 : vector<1x256xf32>
    %144 = arith.addf %140, %143 : vector<1x256xf32>
    %c0_67 = arith.constant 0 : index
    %145 = memref.load %arg7[%c0_67] : memref<1xf32, #tpu.memory_space<smem>>
    %146 = vector.broadcast %145 : f32 to vector<1x256xf32>
    %147 = arith.addf %144, %146 : vector<1x256xf32>
    %cst_68 = arith.constant 0.000000e+00 : f32
    %148 = vector.broadcast %cst_68 : f32 to vector<1x256xf32>
    %149 = arith.subf %148, %147 : vector<1x256xf32>
    %150 = math.exp %149 : vector<1x256xf32>
    %cst_69 = arith.constant 1.000000e+00 : f32
    %151 = vector.broadcast %cst_69 : f32 to vector<1x256xf32>
    %152 = arith.addf %151, %150 : vector<1x256xf32>
    %cst_70 = arith.constant 1.000000e+00 : f32
    %153 = vector.broadcast %cst_70 : f32 to vector<1x256xf32>
    %154 = arith.divf %153, %152 : vector<1x256xf32>
    %c0_71 = arith.constant 0 : index
    %c0_72 = arith.constant 0 : index
    %155 = vector.load %arg8[%c0_71, %c0_72] : memref<1x256xf32, #tpu.memory_space<vmem>>, vector<1x256xf32>
    tpu.vector_store %arg8[%c0_71, %c0_72], %154 {strides = array<i32>} : memref<1x256xf32, #tpu.memory_space<vmem>>, vector<1x256xf32>,
    return
  }
  func.func @transform_0(%arg0: i32) -> (i32, i32) {
    %c0_i32 = arith.constant 0 : i32
    %c0_i32_0 = arith.constant 0 : i32
    return %c0_i32, %arg0 : i32, i32
  }
  func.func @transform_1(%arg0: i32) -> (i32, i32) {
    %c0_i32 = arith.constant 0 : i32
    %c0_i32_0 = arith.constant 0 : i32
    %c0_i32_1 = arith.constant 0 : i32
    return %c0_i32, %c0_i32_0 : i32, i32
  }
  func.func @transform_2(%arg0: i32) -> i32 {
    %c0_i32 = arith.constant 0 : i32
    %c0_i32_0 = arith.constant 0 : i32
    return %c0_i32 : i32
  }
  func.func @transform_3(%arg0: i32) -> (i32, i32) {
    %c0_i32 = arith.constant 0 : i32
    %c0_i32_0 = arith.constant 0 : i32
    %c0_i32_1 = arith.constant 0 : i32
    return %c0_i32, %c0_i32_0 : i32, i32
  }
  func.func @transform_4(%arg0: i32) -> i32 {
    %c0_i32 = arith.constant 0 : i32
    %c0_i32_0 = arith.constant 0 : i32
    return %c0_i32 : i32
  }
  func.func @transform_5(%arg0: i32) -> i32 {
    %c0_i32 = arith.constant 0 : i32
    %c0_i32_0 = arith.constant 0 : i32
    return %c0_i32 : i32
  }
  func.func @transform_6(%arg0: i32) -> i32 {
    %c0_i32 = arith.constant 0 : i32
    %c0_i32_0 = arith.constant 0 : i32
    return %c0_i32 : i32
  }
  func.func @transform_7(%arg0: i32) -> (i32, i32) {
    %c0_i32 = arith.constant 0 : i32
    %c0_i32_0 = arith.constant 0 : i32
    return %c0_i32, %arg0 : i32, i32
  }
}

</mosaic_0001>

<bundles_post_ra>
// kernel: tpu_custom_call.1
= control target key start
LH: loop header
LB: loop body
LE: loop exit
PB: predicated region body
PF: predicated region fallthrough
CT: control target
= control target key end

     0   :  { %s1357_s0 = inlined_call_operand.hbm [shape: f32[2,1024], index: 0, kind: input, shape index: {}]   ;;  %s1358_s1 = inlined_call_operand.vmem [shape: f32[2,5], index: 1, kind: input, shape index: {}]   ;;  %s1359_s2 = inlined_call_operand.vmem [shape: f32[5], index: 2, kind: input, shape index: {}]   ;;  %s1360_s3 = inlined_call_operand.vmem [shape: f32[5,3], index: 3, kind: input, shape index: {}]   ;;  %s1361_s4 = inlined_call_operand.vmem [shape: f32[3], index: 4, kind: input, shape index: {}]   ;;  %s1362_s5 = inlined_call_operand.vmem [shape: f32[3], index: 5, kind: input, shape index: {}]   ;;  %s1363_s6 = inlined_call_operand.<no memory space> [shape: f32[1], index: 6, kind: input, shape index: {}]   ;;  %s1364_s7 = inlined_call_operand.hbm [shape: f32[1,1024], index: 7, kind: output, shape index: {}]  }
   0x1   :  { %1368 = sst [smem:[#allocation20_spill]] %s1357_s0 }
   0x2   :  { %1369 = sst [smem:[#allocation21_spill]] %s1358_s1 }
   0x3   :  { %1370 = sst [smem:[#allocation22_spill]] %s1359_s2 }
   0x4   :  { %12 = sst [smem:[#allocation2]] %s1363_s6 }
   0x5   :  { %13 = vsyncpa [#allocation4], 0 }
   0x6   :  { %15 = vsyncpa [#allocation4 + $0x1], 0 }
   0x7   :  { %16 = vsyncpa [#allocation6], 0 }
   0x8   :  { %17 = vsyncpa [#allocation9], 0 }
   0x9   :  { %18 = vsyncpa [#allocation12], 0 }
   0xa   :  { %19 = vsyncpa [#allocation5], 0 }
   0xb   :  { %21 = vsyncpa [#allocation5 + $0x1], 0  ;;  %s1043_s26 = smov 0   ;;  %s1045_s27 = smov 0  }
   0xc   :  { %s1047_s28 = smov 0   ;;  %s1049_s29 = smov 0  }
   0xd LB: > { %s1371_s2 = sld [smem:[#allocation22_spill]]  ;;  %s1067_s9 = sadd.s32 4294967295, %s991_s29   ;;  %s991_s29 = sphi %s1049_s29, %s1394_s29   ;;  %s987_s28 = sphi %s1047_s28, %s1393_s28   ;;  %s983_s27 = sphi %s1045_s27, %s1392_s27   ;;  %s979_s26 = sphi %s1043_s26, %s1391_s26  }
   0xe   : > { %p650_p0 = scmp.ge.s32.totalorder %s991_s29, 1  ;;  %p1365_p1 = scmp.eq.s32.totalorder %s1067_s9, 0 }
   0xf   : > { %p210_p2 = scmp.lt.s32.totalorder %s991_s29, 5  ;;  %s256_s13 = sshll.u32 %s1361_s4, 4  ;;  %s257_s13 = int_to_ptr.vmem [resolvable:$true] %s256_s13 }
  0x10   : > { %s1373_s1 = sld [smem:[#allocation21_spill]]  ;;  %s245_s20 = sshll.u32 %s1360_s3, 4  ;;  %s1095_s20 = int_to_ptr.vmem [resolvable:$true] %s245_s20 }
  0x11   : > { %p1072_p3 = pnand %p650_p0, %p210_p2 }
  0x13   : > { %s234_s8 = sshll.u32 %s1371_s2, 4  ;;  %p731_p4 = pneg %p1072_p3  ;;  %s235_s8 = int_to_ptr.vmem [resolvable:$true] %s234_s8 }
  0x14   : > { %s1372_s10 = scalar_select %p1072_p3, 1, 0 }
  0x15   : > { %p1086_p5 = pnand %p731_p4, %p1365_p1  ;;  %s808_s21 = scalar_lea.vmem %s235_s8, 16 }
  0x16   : > { %s223_s16 = sshll.u32 %s1373_s1, 4  ;;  %p809_p6 = scmp.ne.s32.totalorder %s235_s8, %s808_s21  ;;  %s1090_s16 = int_to_ptr.vmem [resolvable:$true] %s223_s16 }
  0x17   : > { %p1099_p7 = pneg %p1086_p5  ;;  %p816_p10 = scmp.lt.s32.totalorder %s235_s8, %s235_s8 }
  0x18   : > { %p817_p11 = scmp.lt.s32.totalorder %s808_s21, %s808_s21 }
  0x19   : > { %p811_p8 = pnand %p1099_p7, %p809_p6 }
  0x1a   : > { %p818_p12 = por %p817_p11, %p816_p10 }
  0x1b   : > { %p812_p9 = pneg %p811_p8 }
  0x1d   : > { %p819_p13 = pnand %p818_p12, %p812_p9 }
  0x1f   : > { %822 = shalt.err (!%p819_p13)
}
  0x20   : > { %s993_s23 = smov [#allocation8]   ;;  %s823_s24 = scalar_lea.vmem %s257_s13, 16 }
  0x21   : > { %737 = dma.vmem_to_smem (!%p1086_p5), %s235_s8, 16, %s993_s23, [#allocation9]  }
  0x22   : > { %p824_p0 = scmp.ne.s32.totalorder %s257_s13, %s823_s24  ;;  %p831_p1 = scmp.lt.s32.totalorder %s257_s13, %s257_s13 }
  0x23   : > { %p832_p3 = scmp.lt.s32.totalorder %s823_s24, %s823_s24 }
  0x24   : > { %p826_p2 = pnand %p824_p0, %p1099_p7 }
  0x25   : > { %p833_p6 = por %p832_p3, %p831_p1 }
  0x26   : > { %p827_p4 = pneg %p826_p2 }
  0x28   : > { %p834_p8 = pnand %p833_p6, %p827_p4 }
  0x2a   : > { %837 = shalt.err (!%p834_p8)
}
  0x2b   : > { %s994_s25 = smov [#allocation11]   ;;  %s838_s6 = scalar_lea.vmem %s1090_s16, 32 }
  0x2c   : > { %743 = dma.vmem_to_smem (!%p1086_p5), %s257_s13, 16, %s994_s25, [#allocation12]  }
  0x2d   : > { %p839_p9 = scmp.ne.s32.totalorder %s1090_s16, %s838_s6  ;;  %p846_p12 = scmp.lt.s32.totalorder %s1090_s16, %s1090_s16 }
  0x2e   : > { %p847_p13 = scmp.lt.s32.totalorder %s838_s6, %s838_s6 }
  0x2f   : > { %p841_p10 = pnand %p839_p9, %p1099_p7 }
  0x30   : > { %p848_p0 = por %p847_p13, %p846_p12 }
  0x31   : > { %p842_p11 = pneg %p841_p10 }
  0x33   : > { %p849_p1 = pnand %p848_p0, %p842_p11 }
  0x35   : > { %852 = shalt.err (!%p849_p1)
}
  0x36   : > { %s995_s30 = smov [#allocation7]   ;;  %s853_s8 = scalar_lea.vmem %s1095_s20, 128 }
  0x37   : > { %734 = dma.vmem_to_smem (!%p1086_p5), %s1090_s16, 32, %s995_s30, [#allocation6]  }
  0x38   : > { %p854_p3 = scmp.ne.s32.totalorder %s1095_s20, %s853_s8  ;;  %p861_p6 = scmp.lt.s32.totalorder %s1095_s20, %s1095_s20 }
  0x39   : > { %p862_p8 = scmp.lt.s32.totalorder %s853_s8, %s853_s8 }
  0x3a   : > { %p856_p2 = pnand %p854_p3, %p1099_p7 }
  0x3b   : > { %p863_p9 = por %p862_p8, %p861_p6 }
  0x3c   : > { %p857_p4 = pneg %p856_p2 }
  0x3e   : > { %p864_p10 = pnand %p863_p9, %p857_p4 }
  0x40   : > { %867 = shalt.err (!%p864_p10)
}
  0x41   : > { %s996_s11 = smov [#allocation10]   ;;  %s267_s14 = sshll.u32 %s1362_s5, 4  ;;  %s268_s14 = int_to_ptr.vmem [resolvable:$true] %s267_s14 }
  0x42   : > { %740 = dma.vmem_to_smem (!%p1086_p5), %s1095_s20, 128, %s996_s11, [#allocation9]  }
  0x43   : > { %s868_s15 = scalar_lea.vmem %s268_s14, 16  ;;  %p876_p0 = scmp.lt.s32.totalorder %s268_s14, %s268_s14 }
  0x44   : > { %p869_p11 = scmp.ne.s32.totalorder %s268_s14, %s868_s15  ;;  %p877_p1 = scmp.lt.s32.totalorder %s868_s15, %s868_s15 }
  0x46   : > { %p871_p12 = pnand %p869_p11, %p1099_p7  ;;  %p878_p3 = por %p877_p1, %p876_p0 }
  0x48   : > { %p872_p13 = pneg %p871_p12 }
  0x4a   : > { %p879_p2 = pnand %p878_p3, %p872_p13 }
  0x4c   : > { %882 = shalt.err (!%p879_p2)
}
  0x4d   : > { %s997_s16 = smov [#allocation13]   ;;  %s649_s18 = sadd.s32 4294967294, %s991_s29  }
  0x4e   : > { %746 = dma.vmem_to_smem (!%p1086_p5), %s268_s14, 16, %s997_s16, [#allocation12]  }
  0x4f   : > { %s1138_s19 = sadd.s32 1, %s991_s29   ;;  %s34_s17 = sadd.s32 1, %s987_s28 }
  0x50   : > { %s31_s20 = ssub.s32 %s991_s29, %s1138_s19  ;;  %p41_p7 = scmp.ne.s32.totalorder %s987_s28, %s983_s27 }
  0x51   : > { %p32_p4 = scmp.eq.s32.totalorder %s31_s20, 0  ;;  %p42_p6 = scmp.eq.s32.totalorder %s991_s29, 0 }
  0x52   : > { %p47_p8 = scmp.ne.s32.totalorder %s983_s27, %s979_s26  ;;  %p197_p9 = scmp.eq.s32.totalorder %s1067_s9, 3 }
  0x53   : > { %s1150_s21 = scalar_select %p32_p4, %s987_s28, %s34_s17  }
  0x54   : > { %p43_p10 = por %p42_p6, %p41_p7  ;;  %p1376_p11 = scmp.eq.s32.totalorder %s1067_s9, 0 }
  0x55   : > { %p1158_p5 = por %p197_p9, %p41_p7  ;;  %p203_p13 = scmp.eq.s32.totalorder %s649_s18, 3 }
  0x56   : > { %p1154_p12 = por %p1376_p11, %p47_p8  ;;  %p760_p0 = scmp.lt.s32.totalorder %s991_s29, 4 }
  0x57   : > { %s1378_s23 = scalar_select %p1158_p5, 1, 0 }
  0x58   : > { %s281_s24 = sand.u32 1, %s987_s28   ;;  %p1164_p1 = por %p203_p13, %p47_p8 }
  0x59   : > { %s657_s6 = sshll.u32 %s281_s24, 2  ;;  %s705_s30 = sshll.u32 %s991_s29, 6 }
  0x5a   : > { %s1379_s25 = scalar_select %p1164_p1, 1, 0 }
  0x5b   : > { %s1380_s0 = sld [smem:[#allocation20_spill]]  ;;  %s285_s13 = scalar_lea.vmem [#allocation3], %s657_s6 }
  0x5c   : > { %s293_s14 = sshll.u32 %s285_s13, 4  ;;  %p1174_p3 = pnand %p760_p0, %p43_p10  ;;  %s1178_s14 = int_to_ptr.vmem [resolvable:$true] %s293_s14 }
  0x5d   : > { %s282_s16 = scalar_lea.sflag [#allocation4], %s281_s24 }
  0x5e   : > { %p885_p7 = pneg %p1174_p3 }
  0x61   : > { %s1172_s12 = scalar_lea.hbm %s1380_s0, %s705_s30  ;;  %s888_s6 = scalar_lea.hbm %s1380_s0, 256 }
  0x62   : > { %s883_s18 = scalar_lea.hbm %s1172_s12, 64  ;;  %p889_p8 = scmp.lt.u32.totalorder %s1172_s12, %s1380_s0 }
  0x63   : > { %p884_p2 = scmp.ne.s32.totalorder %s1172_s12, %s883_s18  ;;  %p890_p9 = scmp.lt.u32.totalorder %s888_s6, %s883_s18 }
  0x64   : > { %p892_p11 = scmp.lt.u32.totalorder %s883_s18, %s1172_s12 }
  0x65   : > { %p886_p4 = pnand %p885_p7, %p884_p2  ;;  %p891_p10 = por %p890_p9, %p889_p8 }
  0x67   : > { %p887_p6 = pneg %p886_p4  ;;  %p893_p13 = por %p892_p11, %p891_p10 }
  0x69   : > { %p894_p0 = pnand %p893_p13, %p887_p6 }
  0x6b   : > { %897 = shalt.err (!%p894_p0)
}
  0x6c   : > { %s898_s24 = scalar_lea.vmem %s1178_s14, 64  ;;  %s998_s11 = smov [#allocation3]  }
  0x6d   : > { %p899_p2 = scmp.ne.s32.totalorder %s1178_s14, %s898_s24  ;;  %s903_s13 = sshll.u32 %s998_s11, 4  ;;  %s904_s13 = int_to_ptr.vmem [resolvable:$false] %s903_s13 }
  0x6e   : > { %s905_s17 = scalar_lea.vmem %s904_s13, 128  ;;  %p906_p5 = scmp.lt.s32.totalorder %s1178_s14, %s904_s13 }
  0x6f   : > { %p901_p4 = pnand %p899_p2, %p885_p7  ;;  %p907_p8 = scmp.lt.s32.totalorder %s905_s17, %s898_s24 }
  0x71   : > { %p902_p1 = pneg %p901_p4  ;;  %p908_p9 = por %p907_p8, %p906_p5 }
  0x73   : > { %p909_p10 = pnand %p908_p9, %p902_p1 }
  0x75   : > { %912 = shalt.err (!%p909_p10)
}
  0x76   : > { %750 = dma.hbm_to_vmem [thread:$0]  (!%p1174_p3), %s1172_s12, 64, %s1178_s14, %s282_s16  }
  0x77   : > { %p1382_p6 = scmp.ne.s32.totalorder %s1372_s10, 0 }
  0x78   : > { %s1208_s18 = sand.u32 (!%p1382_p6), 1, %s983_s27  }
  0x79   : > { %302 = sbr.rel (%p1382_p6) target bundleno = 227 (0xe3), region = 48  ;;  %s661_s20 = sshll.u32 (!%p1382_p6), %s1208_s18, 2 }
  0x7a   : > { %s305_s6 = scalar_lea.sflag (!%p1382_p6), [#allocation4], %s1208_s18  ;;  %s308_s30 = scalar_lea.vmem (!%p1382_p6), [#allocation3], %s661_s20 }
  0x80   : > { %958 = dma.done.wait (%p1154_p12), %s305_s6, 64  }
  0x81   : > { %960 = vsyncadd (%p1154_p12), %s305_s6, 4294967232  ;;  %p1383_p5 = scmp.eq.s32.totalorder %s1067_s9, 0 }
  0x83   : > { %962 = dma.done.wait (%p1383_p5), [#allocation6], 32   ;;  %p1384_p1 = pmov %p1383_p5 }
  0x85   : > { %964 = vsyncadd (%p1384_p1), [#allocation6], 4294967264  ;;  %p1385_p3 = pmov %p1384_p1 }
  0x86   : > { %p1386_p7 = pmov %p1384_p1 }
  0x87   : > { %966 = dma.done.wait (%p1385_p3), [#allocation9], 144  }
  0x88   : > { %968 = vsyncadd (%p1386_p7), [#allocation9], 4294967152  ;;  %p1387_p11 = pmov %p1384_p1 }
  0x89   : > { %p1388_p13 = pmov %p1384_p1 }
  0x8a   : > { %970 = dma.done.wait (%p1387_p11), [#allocation12], 32  }
  0x8b   : > { %972 = vsyncadd (%p1388_p13), [#allocation12], 4294967264 }
  0x8c   : > { %333 = sfence }
  0x8d   : > { %s365_s10 = sld [smem:[#allocation7]]  ;;  %v362_v0 = vld [vmem:[%s308_s30] ss:$2 sm:$0x3]  ;;  %s670_s14 = sld [smem:[#allocation7 + $0x1]] }
  0x8e   : > { %s669_s22 = sld [smem:[#allocation7 + $0x80]]  ;;  %v668_v1 = vld [vmem:[%s308_s30 + $0x1] ss:$2 sm:$0x3]  ;;  %s671_s15 = sld [smem:[#allocation7 + $0x81]] }
  0x8f   : > { %s1228_s12 = sld [smem:[#allocation8]]  ;;  %s1230_s16 = sld [smem:[#allocation8 + $0x1]] }
  0x90   : > { %s673_s8 = sld [smem:[#allocation7 + $0x2]]  ;;  %s1234_s13 = sld [smem:[#allocation7 + $0x3]] }
  0x91   : > { %s674_s24 = sld [smem:[#allocation7 + $0x82]]  ;;  %s1236_s17 = sld [smem:[#allocation7 + $0x83]] }
  0x92   : > { %s1232_s11 = sld [smem:[#allocation8 + $0x2]]  ;;  %s1238_s20 = sld [smem:[#allocation8 + $0x3]] }
  0x93   : > { %v366_v2 = vstv %s365_s10  ;;  %s1240_s6 = sld [smem:[#allocation7 + $0x4]]  ;;  %v377_v6 = vstv %s670_s14  ;;  %s1246_s1 = sld [smem:[#allocation10]] }
  0x94   : > { %v367_v3 = vmul.f32 %v366_v2, %v362_v0  ;;  %v369_v4 = vstv %s669_s22  ;;  %s1242_s30 = sld [smem:[#allocation7 + $0x84]]  ;;  %v378_v8 = vmul.f32 %v377_v6, %v362_v0  ;;  %v380_v9 = vstv %s671_s15  ;;  %s1250_s10 = sld [smem:[#allocation10 + $0x80]] }
  0x95   : > { %v370_v5 = vmul.f32 %v668_v1, %v369_v4  ;;  %s1244_s0 = sld [smem:[#allocation8 + $0x4]]  ;;  %v373_v7 = vstv %s1228_s12  ;;  %v384_v10 = vstv %s1230_s16  ;;  %s1252_s22 = sld [smem:[#allocation10 + $0x100]]  ;;  %v381_v12 = vmul.f32 %v668_v1, %v380_v9 }
  0x96   : > { %v388_v13 = vstv %s673_s8  ;;  %s1254_s14 = sld [smem:[#allocation10 + $0x180]]  ;;  %v399_v18 = vstv %s1234_s13  ;;  %s1260_s12 = sld [smem:[#allocation10 + $0x1]] }
  0x97   : > { %v371_v11 = vadd.f32 %v370_v5, %v367_v3  ;;  %v391_v14 = vstv %s674_s24  ;;  %s1256_s2 = sld [smem:[#allocation10 + $0x200]]  ;;  %v389_v15 = vmul.f32 %v388_v13, %v362_v0  ;;  %v382_v20 = vadd.f32 %v381_v12, %v378_v8  ;;  %s1263_s15 = sld [smem:[#allocation10 + $0x81]] }
  0x98   : > { %v392_v16 = vmul.f32 %v668_v1, %v391_v14  ;;  %v395_v17 = vstv %s1232_s11  ;;  %v400_v21 = vmul.f32 %v399_v18, %v362_v0  ;;  %v402_v22 = vstv %s1236_s17  ;;  %s1265_s16 = sld [smem:[#allocation10 + $0x101]]  ;;  %s1269_s8 = sld [smem:[#allocation11]] }
  0x99   : > { %v374_v19 = vadd.f32 %v373_v7, %v371_v11  ;;  %v403_v24 = vmul.f32 %v668_v1, %v402_v22  ;;  %v406_v25 = vstv %s1238_s20  ;;  %v410_v26 = vstv %s1240_s6  ;;  %s1272_s24 = sld [smem:[#allocation10 + $0x181]]  ;;  %s1277_s13 = sld [smem:[#allocation10 + $0x2]] }
  0x9a   : > { %v393_v23 = vadd.f32 %v392_v16, %v389_v15  ;;  %v385_v28 = vadd.f32 %v384_v10, %v382_v20  ;;  %v411_v29 = vmul.f32 %v410_v26, %v362_v0  ;;  %v413_v30 = vstv %s1242_s30  ;;  %s1274_s11 = sld [smem:[#allocation10 + $0x201]]  ;;  %s1282_s17 = sld [smem:[#allocation10 + $0x82]] }
  0x9b   : > { %v375_v27 = vmax.f32 %v374_v19, 0.0  ;;  %v404_v32 = vadd.f32 %v403_v24, %v400_v21  ;;  %v414_v33 = vmul.f32 %v668_v1, %v413_v30  ;;  %v417_v34 = vstv %s1244_s0  ;;  %s1284_s20 = sld [smem:[#allocation10 + $0x102]]  ;;  %s1295_s6 = sld [smem:[#allocation11 + $0x1]] }
  0x9c   : > { %v396_v31 = vadd.f32 %v395_v17, %v393_v23  ;;  %v386_v35 = vmax.f32 %v385_v28, 0.0  ;;  %v421_v36 = vstv %s1246_s1  ;;  %v424_v37 = vstv %s1250_s10  ;;  %s1288_s0 = sld [smem:[#allocation10 + $0x182]]  ;;  %s698_s10 = sld [smem:[#allocation13 + $0x1]] }
  0x9d   : > { %v428_v38 = vstv %s1252_s22  ;;  %v407_v40 = vadd.f32 %v406_v25, %v404_v32  ;;  %v415_v41 = vadd.f32 %v414_v33, %v411_v29  ;;  %v422_v42 = vmul.f32 %v421_v36, %v375_v27  ;;  %s1290_s1 = sld [smem:[#allocation10 + $0x202]]  ;;  %p1389_p0 = scmp.ne.s32.totalorder %s1378_s23, 0 }
  0x9e   : > { %v397_v39 = vmax.f32 %v396_v31, 0.0  ;;  %v425_v43 = vmul.f32 %v424_v37, %v386_v35  ;;  %v432_v44 = vstv %s1254_s14  ;;  %v436_v45 = vstv %s1256_s2  ;;  %s1300_s2 = sld [smem:[#allocation13]]  ;;  %s697_s30 = sld [smem:[#allocation11 + $0x2]] }
  0x9f   : > { %v408_v46 = vmax.f32 %v407_v40, 0.0  ;;  %v418_v47 = vadd.f32 %v417_v34, %v415_v41  ;;  %v444_v49 = vstv %s1260_s12  ;;  %v447_v52 = vstv %s1263_s15  ;;  %s699_s22 = sld [smem:[#allocation13 + $0x2]]  ;;  %s500_s14 = sld [smem:[#allocation2]] }
  0xa0   : > { %v429_v48 = vmul.f32 %v428_v38, %v397_v39  ;;  %v426_v50 = vadd.f32 %v425_v43, %v422_v42  ;;  %v445_v51 = vmul.f32 %v444_v49, %v375_v27  ;;  %v451_v53 = vstv %s1265_s16  ;;  %s667_s12 = sshll.u32 %s1208_s18, 1  ;;  %s706_s15 = sshll.u32 %s1067_s9, 5 }
  0xa1   : > { %v419_v54 = vmax.f32 %v418_v47, 0.0  ;;  %v433_v55 = vmul.f32 %v432_v44, %v408_v46  ;;  %v448_v56 = vmul.f32 %v447_v52, %v386_v35  ;;  %v452_v57 = vmul.f32 %v451_v53, %v397_v39  ;;  %s359_s16 = scalar_lea.vmem [#allocation14], %s667_s12  ;;  %s999_s9 = smov [#allocation14]  }
  0xa2   : > { %v430_v58 = vadd.f32 %v429_v48, %v426_v50  ;;  %v440_v59 = vstv %s1269_s8  ;;  %v455_v60 = vstv %s1272_s24  ;;  %v459_v61 = vstv %s1274_s11  ;;  %s529_s8 = sshll.u32 %s359_s16, 4  ;;  %s1316_s8 = int_to_ptr.vmem [resolvable:$true] %s529_s8 }
  0xa3   : > { %v437_v62 = vmul.f32 %v436_v45, %v419_v54  ;;  %v449_v63 = vadd.f32 %v448_v56, %v445_v51  ;;  %v456_v0 = vmul.f32 %v455_v60, %v408_v46  ;;  %v460_v1 = vmul.f32 %v459_v61, %v419_v54 }
  0xa4   : > { %v434_v2 = vadd.f32 %v433_v55, %v430_v58  ;;  %v467_v3 = vstv %s1277_s13  ;;  %v470_v4 = vstv %s1282_s17  ;;  %v474_v5 = vstv %s1284_s20  ;;  %s1314_s13 = scalar_lea.hbm %s1364_s7, %s706_s15  ;;  %s515_s17 = scalar_lea.sflag [#allocation5], %s1208_s18 }
  0xa5   : > { %v453_v6 = vadd.f32 %v452_v57, %v449_v63  ;;  %v468_v7 = vmul.f32 %v467_v3, %v375_v27  ;;  %v471_v8 = vmul.f32 %v470_v4, %v386_v35  ;;  %v475_v9 = vmul.f32 %v474_v5, %v397_v39  ;;  %s913_s20 = scalar_lea.vmem %s1316_s8, 32 }
  0xa6   : > { %v438_v10 = vadd.f32 %v437_v62, %v434_v2  ;;  %v478_v11 = vstv %s1288_s0  ;;  %v482_v12 = vstv %s1290_s1  ;;  %v463_v17 = vstv %s1295_s6  ;;  %p914_p12 = scmp.ne.s32.totalorder %s1316_s8, %s913_s20  ;;  %s917_s0 = sshll.u32 %s999_s9, 4  ;;  %s918_s0 = int_to_ptr.vmem [resolvable:$false] %s917_s0 }
  0xa7   : > { %v457_v13 = vadd.f32 %v456_v0, %v453_v6  ;;  %v472_v14 = vadd.f32 %v471_v8, %v468_v7  ;;  %v479_v15 = vmul.f32 %v478_v11, %v408_v46  ;;  %v483_v20 = vmul.f32 %v482_v12, %v419_v54  ;;  %s919_s1 = scalar_lea.vmem %s918_s0, 64  ;;  %p920_p8 = scmp.lt.s32.totalorder %s1316_s8, %s918_s0 }
  0xa8   : > { %v441_v16 = vadd.f32 %v440_v59, %v438_v10  ;;  %v490_v22 = vstv %s1300_s2  ;;  %v486_v25 = vstv %s697_s30  ;;  %v493_v26 = vstv %s698_s10  ;;  %p915_p2 = pnand %p914_p12, %p1389_p0  ;;  %p921_p9 = scmp.lt.s32.totalorder %s919_s1, %s913_s20 }
  0xa9   : > { %v461_v18 = vadd.f32 %v460_v1, %v457_v13  ;;  %v476_v19 = vadd.f32 %v475_v9, %v472_v14  ;;  %v497_v32 = vstv %s699_s22  ;;  %v501_v36 = vstv %s500_s14 }
  0xaa   : > { %v442_v21 = vmax.f32 %v441_v16, 0.0  ;;  %v509_v43 = vlaneseq  ;;  %p916_p4 = pneg %p915_p2  ;;  %p922_p10 = por %p921_p9, %p920_p8 }
  0xab   : > { %v464_v23 = vadd.f32 %v463_v17, %v461_v18  ;;  %v480_v24 = vadd.f32 %v479_v15, %v476_v19 }
  0xac   : > { %v491_v29 = vmul.f32 %v490_v22, %v442_v21  ;;  %vm511_vm0 = vcmp.lt.s32.totalorder %v509_v43, 256  ;;  %p923_p6 = pnand %p922_p10, %p916_p4 }
  0xad   : > { %v465_v27 = vmax.f32 %v464_v23, 0.0  ;;  %v484_v28 = vadd.f32 %v483_v20, %v480_v24 }
  0xaf   : > { %v487_v30 = vadd.f32 %v486_v25, %v484_v28  ;;  %v494_v31 = vmul.f32 %v493_v26, %v465_v27 }
  0xb1   : > { %v488_v33 = vmax.f32 %v487_v30, 0.0  ;;  %v495_v34 = vadd.f32 %v494_v31, %v491_v29 }
  0xb3   : > { %v498_v35 = vmul.f32 %v497_v32, %v488_v33 }
  0xb5   : > { %v499_v37 = vadd.f32 %v498_v35, %v495_v34 }
  0xb7   : > { %v502_v38 = vadd.f32 %v501_v36, %v499_v37 }
  0xb9   : > { %v503_v39 = vsub.f32 0.0, %v502_v38 }
  0xbb   : > { %v504_v40 = vmul.f32 1.442695, %v503_v39 }
  0xbd   : > { %804 = vpow2.f32 %v504_v40 }
  0xc7   : > { %v805_v41 = vpop.eup %804 }
  0xc8   : > { %v506_v42 = vadd.f32 1.0, %v805_v41 }
  0xca   : > { %806 = vrcp.f32 %v506_v42 }
  0xd4   : > { %v807_v44 = vpop.eup %806 }
  0xd5   : > { %513 = vst.msk [vmem:[%s359_s16] sm:$0x3] %vm511_vm0, %v807_v44 }
  0xd6   : > { %926 = shalt.err (!%p923_p6)
}
  0xd7   : > { %s927_s18 = scalar_lea.hbm %s1314_s13, 32  ;;  %s931_s30 = scalar_lea.hbm %s1364_s7, 128 }
  0xd8   : > { %p928_p5 = scmp.ne.s32.totalorder %s1314_s13, %s927_s18  ;;  %p932_p7 = scmp.lt.u32.totalorder %s1314_s13, %s1364_s7 }
  0xd9   : > { %p933_p11 = scmp.lt.u32.totalorder %s931_s30, %s927_s18  ;;  %p935_p12 = scmp.lt.u32.totalorder %s927_s18, %s1314_s13 }
  0xda   : > { %p929_p1 = pnand %p928_p5, %p1389_p0 }
  0xdb   : > { %p934_p13 = por %p933_p11, %p932_p7 }
  0xdc   : > { %p930_p3 = pneg %p929_p1 }
  0xdd   : > { %p936_p2 = por %p935_p12, %p934_p13 }
  0xdf   : > { %p937_p4 = pnand %p936_p2, %p930_p3 }
  0xe1   : > { %940 = shalt.err (!%p937_p4)
}
  0xe2   : > { %729 = dma.vmem_to_hbm [thread:$0]  (%p1389_p0), %s1316_s8, 32, %s1314_s13, %s515_s17  }
  0xe3 PF: > { %p766_p8 = scmp.ge.s32.totalorder %s991_s29, 2  ;;  %s541_s14 = sand.u32 1, %s979_s26  }
  0xe4   : > { %p1390_p9 = scmp.ne.s32.totalorder %s1379_s25, 0  ;;  %s542_s12 = scalar_lea.sflag [#allocation5], %s541_s14 }
  0xe6   : > { %p752_p10 = pnand %p766_p8, %p1390_p9 }
  0xe8   : > { %974 = dma.done.wait (!%p752_p10), %s542_s12, 32  }
  0xe9   : > { %976 = vsyncadd (!%p752_p10), %s542_s12, 4294967264  ;;  %p24_p6 = scmp.ge.s32.totalorder %s1138_s19, 6   ;;  %s1391_s26 = smov %s983_s27 }
  0xea   : > { %s1392_s27 = smov %s987_s28  ;;  %s1393_s28 = smov %s1150_s21 }
  0xeb   : > { %s1394_s29 = smov %s1138_s19  ;;  %26 = sbr.rel (!%p24_p6) target bundleno = 13 (0xd), region = 115 }
  0xf2   :  { %547 = vsyncpa [#allocation4], 1 }
  0xf3   :  { %549 = vsyncpa [#allocation4 + $0x1], 1 }
  0xf4   :  { %550 = vsyncpa [#allocation5], 1 }
  0xf5   :  { %552 = vsyncpa [#allocation5 + $0x1], 1 }
  0xf6   :  { %553 = vsyncpa [#allocation6], 1 }
  0xf7   :  { %555 = vsyncpa [#allocation6 + $0x1], 1 }
  0xf8   :  { %556 = vsyncpa [#allocation9], 1 }
  0xf9   :  { %557 = vsyncpa [#allocation12], 1 }

</bundles_post_ra>
